<compile_context>
chip_gen: v7x
topology: tpu7x:2x2x1
jax: 0.10.0
libtpu: 0.0.40
codegen_flags: <defaults>
</compile_context>

<pallas_src>
import functools

import jax
import jax.numpy as jnp
from jax.experimental import pallas as pl
from jax.experimental.pallas import tpu as pltpu

_BN_EPS = 1e-5
EXPANSION = 4                      # Bottleneck expansion (feature_dim = 2048)
_VMEM_LIMIT = 48 * 1024 * 1024     # scoped VMEM request, safe on all TPU gens


# ----------------------------- tiling helpers ------------------------------

def _round_up(x, m):
    return ((x + m - 1) // m) * m


def _pick_m(M):
    if M >= 256:
        return 256, _round_up(M, 256)
    t = _round_up(M, 8)
    return t, t


def _pick_n(N):
    if N >= 256:
        return 256, _round_up(N, 256)
    if N >= 128:
        return 128, _round_up(N, 128)
    return N, N                      # small N: full-dim block (no pad)


def _pick_k(K):
    if K <= 1024:
        return K, K                  # single K step, no padding
    for tk in (1024, 512, 384, 256, 128):
        if K % tk == 0:
            return tk, K
    return 512, _round_up(K, 512)


def _rows_tile(M, C, target_bytes=2 << 20):
    """Row-tile for (M, C) elementwise / reduction kernels (~2 MiB per block)."""
    t = max(8, min(1024, (target_bytes // (4 * C)) // 8 * 8))
    Mp = _round_up(M, 8)
    if Mp <= t:
        return Mp, Mp
    return t, _round_up(M, t)


# ------------------------ fused matmul (MXU) kernels ------------------------

def _mm_kernel(a_ref, b_ref, s_ref, t_ref, o_ref, acc_ref, *, relu):
    k = pl.program_id(2)

    @pl.when(k == 0)
    def _():
        acc_ref[...] = jnp.zeros_like(acc_ref)

    acc_ref[...] += jnp.dot(a_ref[...], b_ref[...],
                            preferred_element_type=jnp.float32)

    @pl.when(k == pl.num_programs(2) - 1)
    def _():
        y = acc_ref[...] * s_ref[...] + t_ref[...]
        if relu:
            y = jnp.maximum(y, 0.0)
        o_ref[...] = y


def _mm_res_kernel(a_ref, b_ref, s_ref, t_ref, r_ref, o_ref, acc_ref, *, relu):
    k = pl.program_id(2)

    @pl.when(k == 0)
    def _():
        acc_ref[...] = jnp.zeros_like(acc_ref)

    acc_ref[...] += jnp.dot(a_ref[...], b_ref[...],
                            preferred_element_type=jnp.float32)

    @pl.when(k == pl.num_programs(2) - 1)
    def _():
        y = acc_ref[...] * s_ref[...] + t_ref[...] + r_ref[...]
        if relu:
            y = jnp.maximum(y, 0.0)
        o_ref[...] = y


def matmul_bn_act(a, b, scale, shift, residual=None, relu=False):
    """(M,K)@(K,N): bf16 MXU operands, f32 accumulation over a tiled K grid
    axis, fused per-column scale/shift (+ optional residual add + ReLU)
    epilogue applied on the last K step."""
    M, K = a.shape
    K2, N = b.shape
    assert K == K2
    tm, Mp = _pick_m(M)
    tn, Np = _pick_n(N)
    tk, Kp = _pick_k(K)
    nk = Kp // tk

    a_p = a.astype(jnp.bfloat16)
    if (Mp, Kp) != (M, K):
        a_p = jnp.pad(a_p, ((0, Mp - M), (0, Kp - K)))
    b_p = b.astype(jnp.bfloat16)
    if (Kp, Np) != (K, N):
        b_p = jnp.pad(b_p, ((0, Kp - K), (0, Np - N)))
    s_p = scale.reshape(1, N).astype(jnp.float32)
    t_p = shift.reshape(1, N).astype(jnp.float32)
    if Np != N:
        s_p = jnp.pad(s_p, ((0, 0), (0, Np - N)))
        t_p = jnp.pad(t_p, ((0, 0), (0, Np - N)))

    in_specs = [
        pl.BlockSpec((tm, tk), lambda i, j, k: (i, k)),
        pl.BlockSpec((tk, tn), lambda i, j, k: (k, j)),
        pl.BlockSpec((1, tn), lambda i, j, k: (0, j)),
        pl.BlockSpec((1, tn), lambda i, j, k: (0, j)),
    ]
    args = [a_p, b_p, s_p, t_p]
    if residual is not None:
        r_p = residual.astype(jnp.float32)
        if (Mp, Np) != r_p.shape:
            r_p = jnp.pad(r_p, ((0, Mp - M), (0, Np - N)))
        # index_map is constant in k -> Pallas fetches this tile once per (i,j)
        in_specs.append(pl.BlockSpec((tm, tn), lambda i, j, k: (i, j)))
        args.append(r_p)
        kern = functools.partial(_mm_res_kernel, relu=relu)
    else:
        kern = functools.partial(_mm_kernel, relu=relu)

    out = pl.pallas_call(
        kern,
        out_shape=jax.ShapeDtypeStruct((Mp, Np), jnp.float32),
        grid=(Mp // tm, Np // tn, nk),
        in_specs=in_specs,
        out_specs=pl.BlockSpec((tm, tn), lambda i, j, k: (i, j)),
        scratch_shapes=[pltpu.VMEM((tm, tn), jnp.float32)],
        compiler_params=pltpu.CompilerParams(
            dimension_semantics=("parallel", "parallel", "arbitrary"),
            vmem_limit_bytes=_VMEM_LIMIT),
    )(*args)
    if (Mp, Np) != (M, N):
        out = out[:M, :N]
    return out


# ------------------- row-tiled elementwise / reduction ops ------------------

def _affine_kernel(x_ref, s_ref, t_ref, o_ref, *, relu):
    y = x_ref[...] * s_ref[...] + t_ref[...]
    if relu:
        y = jnp.maximum(y, 0.0)
    o_ref[...] = y


def _affine_res_kernel(x_ref, s_ref, t_ref, r_ref, o_ref, *, relu):
    y = x_ref[...] * s_ref[...] + t_ref[...] + r_ref[...]
    if relu:
        y = jnp.maximum(y, 0.0)
    o_ref[...] = y


def affine_act(x, scale, shift, residual=None, relu=False):
    """y = x*scale + shift (+ residual) (+ReLU) on (M, C), row-tiled, f32."""
    M, C = x.shape
    tr, Mp = _rows_tile(M, C)

    def padrows(v):
        return v if Mp == M else jnp.pad(v, ((0, Mp - M), (0, 0)))

    args = [padrows(x.astype(jnp.float32)),
            scale.reshape(1, C).astype(jnp.float32),
            shift.reshape(1, C).astype(jnp.float32)]
    in_specs = [pl.BlockSpec((tr, C), lambda i: (i, 0)),
                pl.BlockSpec((1, C), lambda i: (0, 0)),
                pl.BlockSpec((1, C), lambda i: (0, 0))]
    if residual is not None:
        args.append(padrows(residual.astype(jnp.float32)))
        in_specs.append(pl.BlockSpec((tr, C), lambda i: (i, 0)))
        kern = functools.partial(_affine_res_kernel, relu=relu)
    else:
        kern = functools.partial(_affine_kernel, relu=relu)

    out = pl.pallas_call(
        kern,
        out_shape=jax.ShapeDtypeStruct((Mp, C), jnp.float32),
        grid=(Mp // tr,),
        in_specs=in_specs,
        out_specs=pl.BlockSpec((tr, C), lambda i: (i, 0)),
        compiler_params=pltpu.CompilerParams(
            dimension_semantics=("parallel",),
            vmem_limit_bytes=_VMEM_LIMIT),
    )(*args)
    return out[:M] if Mp != M else out


def _moments_kernel(x_ref, o_ref):
    @pl.when(pl.program_id(0) == 0)
    def _():
        o_ref[...] = jnp.zeros_like(o_ref)

    x = x_ref[...]
    s = jnp.sum(x, axis=0, keepdims=True)
    q = jnp.sum(x * x, axis=0, keepdims=True)
    o_ref[...] += jnp.concatenate([s, q], axis=0)


def col_moments(x):
    """Per-column mean / biased variance of (M, C) via a gridded reduction
    (sum and sum-of-squares accumulated in the resident (2, C) output)."""
    M, C = x.shape
    tr, Mp = _rows_tile(M, C)
    xp = x.astype(jnp.float32)
    if Mp != M:
        xp = jnp.pad(xp, ((0, Mp - M), (0, 0)))   # zero rows don't change sums
    sums = pl.pallas_call(
        _moments_kernel,
        out_shape=jax.ShapeDtypeStruct((2, C), jnp.float32),
        grid=(Mp // tr,),
        in_specs=[pl.BlockSpec((tr, C), lambda i: (i, 0))],
        out_specs=pl.BlockSpec((2, C), lambda i: (0, 0)),
        compiler_params=pltpu.CompilerParams(
            dimension_semantics=("arbitrary",),
            vmem_limit_bytes=_VMEM_LIMIT),
    )(xp)
    mean = sums[0:1] / M
    # TODO(synk): E[x^2]-E[x]^2 is cancellation-prone; clamp keeps it sane.
    var = jnp.maximum(sums[1:2] / M - mean * mean, 0.0)
    return mean, var


def _gap_kernel(x_ref, o_ref):
    o_ref[...] = jnp.mean(x_ref[...], axis=1, keepdims=True)


def global_avg_pool(f_nhwc):
    N, H, W, C = f_nhwc.shape
    x = f_nhwc.reshape(N, H * W, C).astype(jnp.float32)
    out = pl.pallas_call(
        _gap_kernel,
        out_shape=jax.ShapeDtypeStruct((N, 1, C), jnp.float32),
        grid=(N,),
        in_specs=[pl.BlockSpec((1, H * W, C), lambda n: (n, 0, 0))],
        out_specs=pl.BlockSpec((1, 1, C), lambda n: (n, 0, 0)),
        compiler_params=pltpu.CompilerParams(
            dimension_semantics=("parallel",)),
    )(x)
    return out.reshape(N, C)


# -------------------------- max pool (3x3, s2, p1) ---------------------------

def _maxpool_kernel(ee_ref, eo_ref, oe_ref, oo_ref, o_ref):
    _, Ho, Wo, _ = o_ref.shape
    ee = ee_ref[...]
    eo = eo_ref[...]
    oe = oe_ref[...]
    oo = oo_ref[...]
    m = ee[:, :Ho, :Wo, :]
    m = jnp.maximum(m, ee[:, :Ho, 1:Wo + 1, :])
    m = jnp.maximum(m, ee[:, 1:Ho + 1, :Wo, :])
    m = jnp.maximum(m, ee[:, 1:Ho + 1, 1:Wo + 1, :])
    m = jnp.maximum(m, eo[:, :Ho, :Wo, :])
    m = jnp.maximum(m, eo[:, 1:Ho + 1, :Wo, :])
    m = jnp.maximum(m, oe[:, :Ho, :Wo, :])
    m = jnp.maximum(m, oe[:, :Ho, 1:Wo + 1, :])
    m = jnp.maximum(m, oo[:, :Ho, :Wo, :])
    o_ref[...] = m


def max_pool2d_3x3s2(x):
    """MaxPool2d(kernel=3, stride=2, pad=1) via a parity-split Pallas kernel:
    no 9x im2col blow-up, only contiguous in-VMEM slices."""
    N, H, W, C = x.shape
    Ho = (H - 1) // 2 + 1
    Wo = (W - 1) // 2 + 1
    Hp, Wp = 2 * (Ho + 1), 2 * (Wo + 1)
    xp = jnp.pad(x.astype(jnp.float32),
                 ((0, 0), (1, Hp - H - 1), (1, Wp - W - 1), (0, 0)),
                 constant_values=-jnp.inf)
    ee = xp[:, 0::2, 0::2, :]
    eo = xp[:, 0::2, 1::2, :]
    oe = xp[:, 1::2, 0::2, :]
    oo = xp[:, 1::2, 1::2, :]
    plane_spec = pl.BlockSpec((1, Ho + 1, Wo + 1, C), lambda n: (n, 0, 0, 0))
    out = pl.pallas_call(
        _maxpool_kernel,
        out_shape=jax.ShapeDtypeStruct((N, Ho, Wo, C), jnp.float32),
        grid=(N,),
        in_specs=[plane_spec, plane_spec, plane_spec, plane_spec],
        out_specs=pl.BlockSpec((1, Ho, Wo, C), lambda n: (n, 0, 0, 0)),
        compiler_params=pltpu.CompilerParams(
            dimension_semantics=("parallel",)),
    )(ee, eo, oe, oo)
    return out


# ------------------------------ JAX glue ops -------------------------------

def _im2col(x, kh, kw, stride, pad):
    N, H, W, C = x.shape
    xp = jnp.pad(x, ((0, 0), (pad, pad), (pad, pad), (0, 0)))
    Ho = (H + 2 * pad - kh) // stride + 1
    Wo = (W + 2 * pad - kw) // stride + 1
    cols = []
    for i in range(kh):
        for j in range(kw):
            cols.append(xp[:, i:i + stride * Ho:stride,
                           j:j + stride * Wo:stride, :])
    p = jnp.stack(cols, axis=3)                      # (N, Ho, Wo, kh*kw, C)
    return p.reshape(N * Ho * Wo, kh * kw * C), (N, Ho, Wo)


def conv_bn_act(x, w, stride, pad, *, relu, residual=None, training):
    """Conv2d (no bias) -> BatchNorm2d -> (+residual) -> (optional ReLU).

    Eval mode fuses the whole chain into the matmul epilogue; training mode
    needs batch statistics of the conv output, so it is conv (identity
    epilogue) -> gridded moments -> fused affine(+residual)(+ReLU)."""
    cout, cin, kh, kw = w.shape
    if kh == 1 and kw == 1:
        xs = x if stride == 1 else x[:, ::stride, ::stride, :]
        N, Ho, Wo, _ = xs.shape
        a = xs.reshape(N * Ho * Wo, cin)
        wmat = w.reshape(cout, cin).T
    else:
        # TODO(synk): 3x3/7x7 convs still materialize im2col patches in HBM;
        # implicit im2col (folding kh*kw into the K grid axis) is not done.
        a, (N, Ho, Wo) = _im2col(x, kh, kw, stride, pad)
        wmat = jnp.transpose(w, (2, 3, 1, 0)).reshape(kh * kw * cin, cout)
    M = N * Ho * Wo

    gamma = jnp.ones((cout,), jnp.float32)    # BN weight init = 1
    beta = jnp.zeros((cout,), jnp.float32)    # BN bias init = 0
    res_flat = None if residual is None else residual.reshape(M, cout)

    if training:
        y = matmul_bn_act(a, wmat, jnp.ones((cout,), jnp.float32),
                          jnp.zeros((cout,), jnp.float32))
        mean, var = col_moments(y)
        scale = gamma.reshape(1, cout) * jax.lax.rsqrt(var + _BN_EPS)
        shift = beta.reshape(1, cout) - mean * scale
        out = affine_act(y, scale, shift, residual=res_flat, relu=relu)
    else:
        # eval: running stats at their init values (mean=0, var=1)
        # TODO(synk): running-stat updates from training are not reproduced.
        scale = gamma * jax.lax.rsqrt(jnp.float32(1.0 + _BN_EPS))
        shift = beta
        out = matmul_bn_act(a, wmat, scale, shift,
                            residual=res_flat, relu=relu)
    return out.reshape(N, Ho, Wo, cout)


def batchnorm1d(x, gamma, beta, training):
    C = x.shape[1]
    if training:
        mean, var = col_moments(x)
        scale = gamma.reshape(1, C) * jax.lax.rsqrt(var + _BN_EPS)
        shift = beta.reshape(1, C) - mean * scale
    else:
        scale = (gamma * jax.lax.rsqrt(jnp.float32(1.0 + _BN_EPS))).reshape(1, C)
        shift = beta.reshape(1, C)
    return affine_act(x, scale, shift, relu=False)


# ------------------------------ parameters ---------------------------------

def _kaiming_conv(key, cout, cin, kh, kw):
    fan_out = cout * kh * kw
    std = (2.0 / fan_out) ** 0.5
    return std * jax.random.normal(key, (cout, cin, kh, kw), jnp.float32)


def _make_bottleneck(key, inplanes, planes, stride):
    k = jax.random.split(key, 4)
    p = dict(
        conv1=_kaiming_conv(k[0], planes, inplanes, 1, 1),
        conv2=_kaiming_conv(k[1], planes, planes, 3, 3),
        conv3=_kaiming_conv(k[2], planes * EXPANSION, planes, 1, 1),
        stride=stride,
    )
    if stride != 1 or inplanes != planes * EXPANSION:
        p['down'] = _kaiming_conv(k[3], planes * EXPANSION, inplanes, 1, 1)
    return p


def init_global_params(key, num_classes, layers=(1, 1, 1, 1)):
    keys = jax.random.split(key, 6)
    params = {'conv1': _kaiming_conv(keys[0], 64, 3, 7, 7)}
    inplanes = 64
    plan = [(64, layers[0], 1, keys[1]),
            (128, layers[1], 2, keys[2]),
            (256, layers[2], 2, keys[3]),
            (512, layers[3], 1, keys[4])]
    for li, (planes, nblocks, stride, lkey) in enumerate(plan, start=1):
        bkeys = jax.random.split(lkey, nblocks)
        blocks = []
        for bi in range(nblocks):
            s = stride if bi == 0 else 1
            blocks.append(_make_bottleneck(bkeys[bi], inplanes, planes, s))
            inplanes = planes * EXPANSION
        params[f'layer{li}'] = blocks
    # classifier: Linear(2048, num_classes, bias=False), weight ~ N(0, 0.001)
    params['classifier'] = 0.001 * jax.random.normal(
        keys[5], (num_classes, 2048), jnp.float32)
    return params
    # NOTE: cbamlayer1/2/3 are constructed in the PyTorch module but never used
    # in GLOBAL.forward, so their parameters are omitted here.


# ------------------------------ forward pass --------------------------------

def bottleneck_forward(x, p, training):
    out = conv_bn_act(x, p['conv1'], 1, 0, relu=True, training=training)
    out = conv_bn_act(out, p['conv2'], p['stride'], 1, relu=True,
                      training=training)
    if 'down' in p:
        identity = conv_bn_act(x, p['down'], p['stride'], 0, relu=False,
                               training=training)
    else:
        identity = x
    # conv3 -> bn3 -> (+identity) -> ReLU, residual fused into the epilogue
    out = conv_bn_act(out, p['conv3'], 1, 0, relu=True, residual=identity,
                      training=training)
    return out


def global_forward(params, x_nchw, training=True):
    """Matches GLOBAL.forward: returns (prob, t_p) in training, t_b in eval."""
    x = jnp.transpose(x_nchw, (0, 2, 3, 1)).astype(jnp.float32)  # NCHW -> NHWC
    # stem: conv1 / bn1 / relu / maxpool
    x = conv_bn_act(x, params['conv1'], 2, 3, relu=True, training=training)
    x = max_pool2d_3x3s2(x)
    for li in range(1, 5):
        for blk in params[f'layer{li}']:
            x = bottleneck_forward(x, blk, training)
    t_p = global_avg_pool(x)                                    # (N, 2048)
    # bottleneck BatchNorm1d(2048): weight=1, bias=0 (bias frozen at 0)
    t_b = batchnorm1d(t_p, jnp.ones((2048,), jnp.float32),
                      jnp.zeros((2048,), jnp.float32), training)
    if not training:
        return t_b
    ncls = params['classifier'].shape[0]
    # Linear(2048, num_classes, bias=False) via the fused matmul (identity
    # epilogue: scale=1, shift=0).
    prob = matmul_bn_act(t_b, params['classifier'].T,
                         jnp.ones((ncls,), jnp.float32),
                         jnp.zeros((ncls,), jnp.float32))
    return prob, t_p


# --------------------------------- main --------------------------------------

if __name__ == "__main__":
    key = jax.random.PRNGKey(0)
    pkey, xkey = jax.random.split(key)

    num_classes = 10
    params = init_global_params(pkey, num_classes, layers=(1, 1, 1, 1))

    # small NCHW input, consistent with the 3-channel conv1 stem
    x = jax.random.normal(xkey, (2, 3, 32, 32), jnp.float32)

    prob, t_p = global_forward(params, x, training=True)   # training path
    t_b = global_forward(params, x, training=False)        # eval path
    jax.block_until_ready((prob, t_p, t_b))

    assert prob.shape == (2, num_classes)
    assert t_p.shape == (2, 2048)
    assert t_b.shape == (2, 2048)
    assert jnp.all(jnp.isfinite(prob)) and jnp.all(jnp.isfinite(t_b))
    print("KERNEL_OK")
</pallas_src>

<mosaic_0001>
module attributes {stable_mosaic.version = 11 : i64} {
  func.func @_mm_kernel(%arg0: i32, %arg1: i32, %arg2: i32, %arg3: memref<256x147xbf16, #tpu.memory_space<vmem>>, %arg4: memref<147x64xbf16, #tpu.memory_space<vmem>>, %arg5: memref<1x64xf32, #tpu.memory_space<vmem>>, %arg6: memref<1x64xf32, #tpu.memory_space<vmem>>, %arg7: memref<256x64xf32, #tpu.memory_space<vmem>>, %arg8: memref<256x64xf32, #tpu.memory_space<vmem>>) attributes {dimension_semantics = [#tpu.dimension_semantics<parallel>, #tpu.dimension_semantics<parallel>, #tpu.dimension_semantics<arbitrary>], iteration_bounds = array<i64: 2, 1, 1>, scalar_prefetch = 0 : i64, scratch_operands = 1 : i64, tpu.core_type = #tpu.core_type<tc>, window_params = [{transform_indices = @transform_0, window_bounds = array<i64: 256, 147>}, {transform_indices = @transform_1, window_bounds = array<i64: 147, 64>}, {transform_indices = @transform_2, window_bounds = array<i64: 1, 64>}, {transform_indices = @transform_3, window_bounds = array<i64: 1, 64>}, {transform_indices = @transform_4, window_bounds = array<i64: 256, 64>}]} {
    %c0_i32 = arith.constant 0 : i32
    %0 = arith.cmpi eq, %arg2, %c0_i32 : i32
    %1 = arith.extui %0 : i1 to i32
    %c0_i32_0 = arith.constant 0 : i32
    %2 = arith.cmpi ne, %1, %c0_i32_0 : i32
    scf.if %2 {
      %cst_10 = arith.constant 0.000000e+00 : f32
      %12 = vector.broadcast %cst_10 : f32 to vector<256x64xf32>
      %c0_11 = arith.constant 0 : index
      %c0_12 = arith.constant 0 : index
      %13 = vector.load %arg8[%c0_11, %c0_12] : memref<256x64xf32, #tpu.memory_space<vmem>>, vector<256x64xf32>
      tpu.vector_store %arg8[%c0_11, %c0_12], %12 {strides = array<i32>} : memref<256x64xf32, #tpu.memory_space<vmem>>, vector<256x64xf32>,
    } else {
    }
    %c0 = arith.constant 0 : index
    %c0_1 = arith.constant 0 : index
    %3 = vector.load %arg8[%c0, %c0_1] : memref<256x64xf32, #tpu.memory_space<vmem>>, vector<256x64xf32>
    %c0_2 = arith.constant 0 : index
    %c0_3 = arith.constant 0 : index
    %4 = vector.load %arg3[%c0_2, %c0_3] : memref<256x147xbf16, #tpu.memory_space<vmem>>, vector<256x147xbf16>
    %c0_4 = arith.constant 0 : index
    %c0_5 = arith.constant 0 : index
    %5 = vector.load %arg4[%c0_4, %c0_5] : memref<147x64xbf16, #tpu.memory_space<vmem>>, vector<147x64xbf16>
    %cst = arith.constant dense<0.000000e+00> : vector<256x64xf32>
    %6 = tpu.matmul %4, %5, %cst {dimension_numbers = #tpu.dot_dimension_numbers<[1], [0], [0], [1], [0, 0, 1, 1], [], []>} : vector<256x147xbf16>, vector<147x64xbf16>, vector<256x64xf32> -> vector<256x64xf32>
    %7 = arith.addf %3, %6 : vector<256x64xf32>
    %c0_6 = arith.constant 0 : index
    %c0_7 = arith.constant 0 : index
    %8 = vector.load %arg8[%c0_6, %c0_7] : memref<256x64xf32, #tpu.memory_space<vmem>>, vector<256x64xf32>
    tpu.vector_store %arg8[%c0_6, %c0_7], %7 {strides = array<i32>} : memref<256x64xf32, #tpu.memory_space<vmem>>, vector<256x64xf32>,
    %c0_i32_8 = arith.constant 0 : i32
    %9 = arith.cmpi eq, %arg2, %c0_i32_8 : i32
    %10 = arith.extui %9 : i1 to i32
    %c0_i32_9 = arith.constant 0 : i32
    %11 = arith.cmpi ne, %10, %c0_i32_9 : i32
    scf.if %11 {
      %c0_10 = arith.constant 0 : index
      %c0_11 = arith.constant 0 : index
      %12 = vector.load %arg8[%c0_10, %c0_11] : memref<256x64xf32, #tpu.memory_space<vmem>>, vector<256x64xf32>
      %c0_12 = arith.constant 0 : index
      %c0_13 = arith.constant 0 : index
      %13 = vector.load %arg5[%c0_12, %c0_13] : memref<1x64xf32, #tpu.memory_space<vmem>>, vector<1x64xf32>
      %14 = vector.broadcast %13 : vector<1x64xf32> to vector<256x64xf32>
      %15 = arith.mulf %12, %14 : vector<256x64xf32>
      %c0_14 = arith.constant 0 : index
      %c0_15 = arith.constant 0 : index
      %16 = vector.load %arg6[%c0_14, %c0_15] : memref<1x64xf32, #tpu.memory_space<vmem>>, vector<1x64xf32>
      %17 = vector.broadcast %16 : vector<1x64xf32> to vector<256x64xf32>
      %18 = arith.addf %15, %17 : vector<256x64xf32>
      %c0_16 = arith.constant 0 : index
      %c0_17 = arith.constant 0 : index
      %19 = vector.load %arg7[%c0_16, %c0_17] : memref<256x64xf32, #tpu.memory_space<vmem>>, vector<256x64xf32>
      tpu.vector_store %arg7[%c0_16, %c0_17], %18 {strides = array<i32>} : memref<256x64xf32, #tpu.memory_space<vmem>>, vector<256x64xf32>,
    } else {
    }
    return
  }
  func.func @transform_0(%arg0: i32, %arg1: i32, %arg2: i32) -> (i32, i32) {
    %c0_i32 = arith.constant 0 : i32
    return %arg0, %arg2 : i32, i32
  }
  func.func @transform_1(%arg0: i32, %arg1: i32, %arg2: i32) -> (i32, i32) {
    %c0_i32 = arith.constant 0 : i32
    return %arg2, %arg1 : i32, i32
  }
  func.func @transform_2(%arg0: i32, %arg1: i32, %arg2: i32) -> (i32, i32) {
    %c0_i32 = arith.constant 0 : i32
    %c0_i32_0 = arith.constant 0 : i32
    return %c0_i32, %arg1 : i32, i32
  }
  func.func @transform_3(%arg0: i32, %arg1: i32, %arg2: i32) -> (i32, i32) {
    %c0_i32 = arith.constant 0 : i32
    %c0_i32_0 = arith.constant 0 : i32
    return %c0_i32, %arg1 : i32, i32
  }
  func.func @transform_4(%arg0: i32, %arg1: i32, %arg2: i32) -> (i32, i32) {
    %c0_i32 = arith.constant 0 : i32
    return %arg0, %arg1 : i32, i32
  }
}

</mosaic_0001>

<bundles_post_ra>
// kernel: tpu_custom_call.1
= control target key start
LH: loop header
LB: loop body
LE: loop exit
PB: predicated region body
PF: predicated region fallthrough
CT: control target
= control target key end

     0   :  { %s1416_s15 = smov 0   ;;  %s1418_s16 = smov 0   ;;  %s1760_s0 = inlined_call_operand.vmem [shape: bf16[512,147], index: 0, kind: input, shape index: {}]   ;;  %s1761_s1 = inlined_call_operand.vmem [shape: bf16[147,64], index: 1, kind: input, shape index: {}]   ;;  %s1762_s2 = inlined_call_operand.vmem [shape: f32[1,64], index: 2, kind: input, shape index: {}]   ;;  %s1763_s3 = inlined_call_operand.vmem [shape: f32[1,64], index: 3, kind: input, shape index: {}]   ;;  %s1764_s4 = inlined_call_operand.vmem [shape: f32[512,64], index: 4, kind: output, shape index: {}]  }
   0x1   :  { %s1420_s17 = smov 0  }
   0x2 LB: > { %s33_s18 = sadd.s32 1, %s1382_s16  ;;  %p1190_p0 = scmp.ge.s32.totalorder %s1386_s17, 1  ;;  %s1386_s17 = sphi %s1420_s17, %s14_s17   ;;  %s1382_s16 = sphi %s1418_s16, %s1766_s16   ;;  %s1378_s15 = sphi %s1416_s15, %s1765_s15  }
   0x3   : > { %p35_p1 = scmp.ge.s32.totalorder %s33_s18, 2  ;;  %p224_p2 = scmp.lt.s32.totalorder %s1386_s17, 3 }
   0x5   : > { %s1768_s18 = smov (%p35_p1, %s33_s18), 0  ;;  %p225_p3 = pnand %p1190_p0, %p224_p2 }
   0x6   : > { %v1306_v0 = vld [vmem:[%s1761_s1] sm:$0xff] (!%p225_p3)   ;;  %v1388_v1 = vmov (!%p225_p3), 0   ;;  %v1307_v2 = vld [vmem:[%s1761_s1 + $0x8] sm:$0xff] (!%p225_p3)   ;;  %v1308_v3 = vld [vmem:[%s1761_s1 + $0x10] sm:$0xff] (!%p225_p3)   ;;  %s1191_s25 = sshll.u32 (!%p225_p3), %s1378_s15, 5  ;;  %vm313_vm0 = vcmask (!%p225_p3), 523264  }
   0x7   : > { %228 = sbr.rel (%p225_p3) target bundleno = 333 (0x14d), region = 36  ;;  %686 = vmatprep.subr.bf16.mxu0 (!%p225_p3), %v1388_v1  ;;  %1259 = vmatprep.subr.bf16.mxu1 (!%p225_p3), %v1388_v1  ;;  %p274_p4 = scmp.lt.s32.totalorder (!%p225_p3), %s1191_s25, 63  ;;  %v1309_v4 = vld [vmem:[%s1761_s1 + $0x18] sm:$0xff] (!%p225_p3)   ;;  %v1389_v5 = vmov (!%p225_p3), 0.0   ;;  %v1310_v6 = vld [vmem:[%s1761_s1 + $0x20] sm:$0xff] (!%p225_p3)   ;;  %vm630_vm1 = vcmask (!%p225_p3), 154624  }
   0x8   : > { %687 = vmatpush1.bf16.msra.mxu0 (!%p225_p3), %v1306_v0  ;;  %1269 = vmatpush1.bf16.msra.mxu1 (!%p225_p3), %v1306_v0  ;;  %314 = vst.msk [vmem:[#allocation2] sm:$0xff] (!%p225_p3), %vm313_vm0, %v1389_v5  ;;  %315 = vst.msk [vmem:[#allocation2 + $0x8] sm:$0xff] (!%p225_p3), %vm313_vm0, %v1389_v5  ;;  %v1311_v9 = vld [vmem:[%s1761_s1 + $0x28] sm:$0xff] (!%p225_p3)   ;;  %v1312_v10 = vld [vmem:[%s1761_s1 + $0x30] sm:$0xff] (!%p225_p3)   ;;  %vm679_vm2 = vcmask (!%p225_p3), 1040384   ;;  %vm680_vm3 = vcmask (!%p225_p3), 1041408  }
   0x9   : > { %688 = vmatprep.subr.bf16.mxu0 (!%p225_p3), %v1388_v1  ;;  %1260 = vmatprep.subr.bf16.mxu1 (!%p225_p3), %v1388_v1  ;;  %316 = vst.msk [vmem:[#allocation2 + $0x10] sm:$0xff] (!%p225_p3), %vm313_vm0, %v1389_v5  ;;  %317 = vst.msk [vmem:[#allocation2 + $0x18] sm:$0xff] (!%p225_p3), %vm313_vm0, %v1389_v5  ;;  %v1313_v11 = vld [vmem:[%s1761_s1 + $0x38] sm:$0xff] (!%p225_p3)   ;;  %v1390_v12 = vmov (!%p225_p3), 65535   ;;  %v1314_v14 = vld [vmem:[%s1761_s1 + $0x40] sm:$0xff] (!%p225_p3)  }
   0xa   : > { %318 = vst.msk [vmem:[#allocation2 + $0x20] sm:$0xff] (!%p225_p3), %vm313_vm0, %v1389_v5  ;;  %319 = vst.msk [vmem:[#allocation2 + $0x28] sm:$0xff] (!%p225_p3), %vm313_vm0, %v1389_v5  ;;  %v681_v13 = vsel (!%p225_p3), %vm679_vm2, 4294967295, %v1390_v12  ;;  %v1315_v15 = vld [vmem:[%s1761_s1 + $0x48] ss:$0 sps:$4 sm:$0x33] (!%p225_p3)  }
   0xb   : > { %320 = vst.msk [vmem:[#allocation2 + $0x30] sm:$0xff] (!%p225_p3), %vm313_vm0, %v1389_v5  ;;  %321 = vst.msk [vmem:[#allocation2 + $0x38] sm:$0xff] (!%p225_p3), %vm313_vm0, %v1389_v5  ;;  %v682_v16 = vsel (!%p225_p3), %vm680_vm3, %v681_v13, 0  ;;  %v1586_v12 = vld [vmem:[%s1763_s3] ss:$0 sm:$0xff] (!%p225_p3) }
   0xc   : > { %689 = vmatpush1.bf16.msra.mxu0 (!%p225_p3), %v1307_v2  ;;  %1270 = vmatpush1.bf16.msra.mxu1 (!%p225_p3), %v1307_v2  ;;  %322 = vst.msk [vmem:[#allocation2 + $0x40] sm:$0xff] (!%p225_p3), %vm313_vm0, %v1389_v5  ;;  %323 = vst.msk [vmem:[#allocation2 + $0x48] sm:$0xff] (!%p225_p3), %vm313_vm0, %v1389_v5  ;;  %v684_v17 = vand.u32 (!%p225_p3), %v1315_v15, %v682_v16  ;;  %v1581_v2 = vld [vmem:[%s1762_s2] ss:$0 sm:$0xff] (!%p225_p3) }
   0xd   : > { %690 = vmatprep.subr.bf16.mxu0 (!%p225_p3), %v1388_v1  ;;  %1261 = vmatprep.subr.bf16.mxu1 (!%p225_p3), %v1388_v1  ;;  %324 = vst.msk [vmem:[#allocation2 + $0x50] sm:$0xff] (!%p225_p3), %vm313_vm0, %v1389_v5  ;;  %325 = vst.msk [vmem:[#allocation2 + $0x58] sm:$0xff] (!%p225_p3), %vm313_vm0, %v1389_v5 }
   0xe   : > { %s1770_s25 = smov (!%p274_p4, %s1191_s25), 63  ;;  %326 = vst.msk [vmem:[#allocation2 + $0x60] sm:$0xff] %vm313_vm0, %v1389_v5  ;;  %327 = vst.msk [vmem:[#allocation2 + $0x68] sm:$0xff] %vm313_vm0, %v1389_v5 }
   0xf   : > { %s1258_s28 = sshll.u32 %s1770_s25, 3  ;;  %328 = vst.msk [vmem:[#allocation2 + $0x70] sm:$0xff] %vm313_vm0, %v1389_v5  ;;  %329 = vst.msk [vmem:[#allocation2 + $0x78] sm:$0xff] %vm313_vm0, %v1389_v5  ;;  %v346_v48 = vld [vmem:[#allocation2] sm:$0xff]  ;;  %v347_v52 = vld [vmem:[#allocation2 + $0x8] sm:$0xff] }
  0x10   : > { %691 = vmatpush1.bf16.msra.mxu0 %v1308_v3  ;;  %1271 = vmatpush1.bf16.msra.mxu1 %v1308_v3  ;;  %330 = vst.msk [vmem:[#allocation2 + $0x80] sm:$0xff] %vm313_vm0, %v1389_v5  ;;  %331 = vst.msk [vmem:[#allocation2 + $0x88] sm:$0xff] %vm313_vm0, %v1389_v5  ;;  %s1494_s5 = scalar_lea.vmem %s1760_s0, %s1258_s28  ;;  %v348_v0 = vld [vmem:[#allocation2 + $0x10] sm:$0xff]  ;;  %s1597_s29 = scalar_lea.vmem %s1764_s4, %s1258_s28 }
  0x11   : > { %692 = vmatprep.subr.bf16.mxu0 %v1388_v1  ;;  %1262 = vmatprep.subr.bf16.mxu1 %v1388_v1  ;;  %332 = vst.msk [vmem:[#allocation2 + $0x90] sm:$0xff] %vm313_vm0, %v1389_v5  ;;  %333 = vst.msk [vmem:[#allocation2 + $0x98] sm:$0xff] %vm313_vm0, %v1389_v5  ;;  %v1318_v7 = vld [vmem:[%s1494_s5 + $0x4] ss:$8 sps:$4 sm:$0xff]   ;;  %v1316_v18 = vld [vmem:[%s1494_s5] ss:$8 sps:$4 sm:$0xff]  }
  0x12   : > { %334 = vst.msk [vmem:[#allocation2 + $0xa0] sm:$0xff] %vm313_vm0, %v1389_v5  ;;  %335 = vst.msk [vmem:[#allocation2 + $0xa8] sm:$0xff] %vm313_vm0, %v1389_v5  ;;  %v1321_v8 = vld [vmem:[%s1494_s5 + $0x84] ss:$8 sps:$4 sm:$0xff]   ;;  %1238 = vmatprep.mubr.msk.bf16.mxu0 %vm630_vm1, %v1318_v7  ;;  %v1319_v19 = vld [vmem:[%s1494_s5 + $0x80] ss:$8 sps:$4 sm:$0xff]  }
  0x13   : > { %336 = vst.msk [vmem:[#allocation2 + $0xb0] sm:$0xff] %vm313_vm0, %v1389_v5  ;;  %337 = vst.msk [vmem:[#allocation2 + $0xb8] sm:$0xff] %vm313_vm0, %v1389_v5  ;;  %1246 = vmatprep.mubr.msk.bf16.mxu1 %vm630_vm1, %v1321_v8  ;;  %v1322_v20 = vld [vmem:[%s1494_s5 + $0x14] ss:$8 sps:$4 sm:$0xff]   ;;  %v1326_v22 = vld [vmem:[%s1494_s5 + $0x10] ss:$8 sps:$4 sm:$0xff]  }
  0x14   : > { %338 = vst.msk [vmem:[#allocation2 + $0xc0] sm:$0xff] %vm313_vm0, %v1389_v5  ;;  %339 = vst.msk [vmem:[#allocation2 + $0xc8] sm:$0xff] %vm313_vm0, %v1389_v5  ;;  %693 = vmatpush1.bf16.msra.mxu0 %v1309_v4  ;;  %1272 = vmatpush1.bf16.msra.mxu1 %v1309_v4  ;;  %v1324_v21 = vld [vmem:[%s1494_s5 + $0x94] ss:$8 sps:$4 sm:$0xff]   ;;  %v1327_v23 = vld [vmem:[%s1494_s5 + $0x90] ss:$8 sps:$4 sm:$0xff]  }
  0x15   : > { %340 = vst.msk [vmem:[#allocation2 + $0xd0] sm:$0xff] %vm313_vm0, %v1389_v5  ;;  %341 = vst.msk [vmem:[#allocation2 + $0xd8] sm:$0xff] %vm313_vm0, %v1389_v5  ;;  %694 = vmatprep.subr.bf16.mxu0 %v1388_v1  ;;  %1263 = vmatprep.subr.bf16.mxu1 %v1388_v1  ;;  %v1328_v24 = vld [vmem:[%s1494_s5 + $0x24] ss:$8 sps:$4 sm:$0xff]   ;;  %v1332_v26 = vld [vmem:[%s1494_s5 + $0x20] ss:$8 sps:$4 sm:$0xff]  }
  0x16   : > { %342 = vst.msk [vmem:[#allocation2 + $0xe0] sm:$0xff] %vm313_vm0, %v1389_v5  ;;  %343 = vst.msk [vmem:[#allocation2 + $0xe8] sm:$0xff] %vm313_vm0, %v1389_v5  ;;  %v1330_v25 = vld [vmem:[%s1494_s5 + $0xa4] ss:$8 sps:$4 sm:$0xff]   ;;  %v1333_v27 = vld [vmem:[%s1494_s5 + $0xa0] ss:$8 sps:$4 sm:$0xff]  }
  0x17   : > { %344 = vst.msk [vmem:[#allocation2 + $0xf0] sm:$0xff] %vm313_vm0, %v1389_v5  ;;  %345 = vst.msk [vmem:[#allocation2 + $0xf8] sm:$0xff] %vm313_vm0, %v1389_v5  ;;  %v1334_v28 = vld [vmem:[%s1494_s5 + $0x34] ss:$8 sps:$4 sm:$0xff]   ;;  %v1338_v30 = vld [vmem:[%s1494_s5 + $0x30] ss:$8 sps:$4 sm:$0xff]  }
  0x18   : > { %695 = vmatpush1.bf16.msra.mxu0 %v1310_v6  ;;  %1273 = vmatpush1.bf16.msra.mxu1 %v1310_v6  ;;  %v1336_v29 = vld [vmem:[%s1494_s5 + $0xb4] ss:$8 sps:$4 sm:$0xff]   ;;  %v1339_v31 = vld [vmem:[%s1494_s5 + $0xb0] ss:$8 sps:$4 sm:$0xff]   ;;  %v1340_v32 = vld [vmem:[%s1494_s5 + $0x44] ss:$8 sps:$4 sm:$0xff]  }
  0x19   : > { %696 = vmatprep.subr.bf16.mxu0 %v1388_v1  ;;  %1264 = vmatprep.subr.bf16.mxu1 %v1388_v1  ;;  %v1342_v33 = vld [vmem:[%s1494_s5 + $0xc4] ss:$8 sps:$4 sm:$0xff]   ;;  %v1344_v34 = vld [vmem:[%s1494_s5 + $0x40] ss:$8 sps:$4 sm:$0xff]   ;;  %v1346_v36 = vld [vmem:[%s1494_s5 + $0x54] ss:$8 sps:$4 sm:$0xff]  }
  0x1a   : > { %v1345_v35 = vld [vmem:[%s1494_s5 + $0xc0] ss:$8 sps:$4 sm:$0xff]   ;;  %v1348_v37 = vld [vmem:[%s1494_s5 + $0xd4] ss:$8 sps:$4 sm:$0xff]   ;;  %v1350_v38 = vld [vmem:[%s1494_s5 + $0x50] ss:$8 sps:$4 sm:$0xff]  }
  0x1b   : > { %v1351_v39 = vld [vmem:[%s1494_s5 + $0xd0] ss:$8 sps:$4 sm:$0xff]   ;;  %v1352_v40 = vld [vmem:[%s1494_s5 + $0x64] ss:$8 sps:$4 sm:$0xff]   ;;  %v1356_v42 = vld [vmem:[%s1494_s5 + $0x60] ss:$8 sps:$4 sm:$0xff]  }
  0x1c   : > { %697 = vmatpush1.bf16.msra.mxu0 %v1311_v9  ;;  %1274 = vmatpush1.bf16.msra.mxu1 %v1311_v9  ;;  %v1354_v41 = vld [vmem:[%s1494_s5 + $0xe4] ss:$8 sps:$4 sm:$0xff]   ;;  %v1357_v43 = vld [vmem:[%s1494_s5 + $0xe0] ss:$8 sps:$4 sm:$0xff]   ;;  %v1358_v44 = vld [vmem:[%s1494_s5 + $0x74] ss:$8 sps:$4 sm:$0xff]  }
  0x1d   : > { %698 = vmatprep.subr.bf16.mxu0 %v1388_v1  ;;  %1265 = vmatprep.subr.bf16.mxu1 %v1388_v1  ;;  %v1360_v45 = vld [vmem:[%s1494_s5 + $0xf4] ss:$8 sps:$4 sm:$0xff]   ;;  %v1362_v46 = vld [vmem:[%s1494_s5 + $0x70] ss:$8 sps:$4 sm:$0xff]   ;;  %v362_v49 = vld [vmem:[#allocation2 + $0x80] sm:$0xff] }
  0x1e   : > { %v1363_v47 = vld [vmem:[%s1494_s5 + $0xf0] ss:$8 sps:$4 sm:$0xff]   ;;  %v363_v53 = vld [vmem:[#allocation2 + $0x88] sm:$0xff] }
  0x1f   : > { %v349_v5 = vld [vmem:[#allocation2 + $0x18] sm:$0xff] }
  0x20   : > { %699 = vmatpush1.bf16.msra.mxu0 %v1312_v10  ;;  %1275 = vmatpush1.bf16.msra.mxu1 %v1312_v10  ;;  %v365_v6 = vld [vmem:[#allocation2 + $0x98] sm:$0xff] }
  0x21   : > { %700 = vmatprep.subr.bf16.mxu0 %v1388_v1  ;;  %1266 = vmatprep.subr.bf16.mxu1 %v1388_v1 }
  0x24   : > { %701 = vmatpush1.bf16.msra.mxu0 %v1313_v11  ;;  %1276 = vmatpush1.bf16.msra.mxu1 %v1313_v11 }
  0x25   : > { %702 = vmatprep.subr.bf16.mxu0 %v1388_v1  ;;  %1267 = vmatprep.subr.bf16.mxu1 %v1388_v1 }
  0x28   : > { %703 = vmatpush1.bf16.msra.mxu0 %v1314_v14  ;;  %1277 = vmatpush1.bf16.msra.mxu1 %v1314_v14 }
  0x29   : > { %704 = vmatprep.subr.bf16.mxu0 %v1388_v1  ;;  %1268 = vmatprep.subr.bf16.mxu1 %v1388_v1  ;;  %v364_v1 = vld [vmem:[#allocation2 + $0x90] sm:$0xff] }
  0x2c   : > { %705 = vmatpush1.bf16.msra.mxu0 %v684_v17  ;;  %1278 = vmatpush1.bf16.msra.mxu1 %v684_v17 }
  0x2f   : > { %719 = vmatmul.mubr.bf16.vlgmr.msra.gmra.mrb[0].mxu0 %v1316_v18  ;;  %783 = vmatmul.mubr.bf16.vlgmr.msra.gmra.mrb[0].mxu1 %v1319_v19 }
  0x30   : > { %1239 = vmatprep.mubr.msk.bf16.mxu0 %vm630_vm1, %v1322_v20  ;;  %1247 = vmatprep.mubr.msk.bf16.mxu1 %vm630_vm1, %v1324_v21 }
  0x37   : > { %727 = vmatmul.mubr.bf16.gmra.mrb[4].mxu0 %v1326_v22  ;;  %791 = vmatmul.mubr.bf16.gmra.mrb[4].mxu1 %v1327_v23 }
  0x38   : > { %1240 = vmatprep.mubr.msk.bf16.mxu0 %vm630_vm1, %v1328_v24  ;;  %1248 = vmatprep.mubr.msk.bf16.mxu1 %vm630_vm1, %v1330_v25 }
  0x3f   : > { %735 = vmatmul.mubr.bf16.gmra.mrb[8].mxu0 %v1332_v26  ;;  %799 = vmatmul.mubr.bf16.gmra.mrb[8].mxu1 %v1333_v27 }
  0x40   : > { %1241 = vmatprep.mubr.msk.bf16.mxu0 %vm630_vm1, %v1334_v28  ;;  %1249 = vmatprep.mubr.msk.bf16.mxu1 %vm630_vm1, %v1336_v29  ;;  %v350_v28 = vld [vmem:[#allocation2 + $0x20] sm:$0xff] }
  0x41   : > { %v366_v29 = vld [vmem:[#allocation2 + $0xa0] sm:$0xff] }
  0x47   : > { %743 = vmatmul.mubr.bf16.gmra.mrb[12].mxu0 %v1338_v30  ;;  %807 = vmatmul.mubr.bf16.gmra.mrb[12].mxu1 %v1339_v31 }
  0x48   : > { %1242 = vmatprep.mubr.msk.bf16.mxu0 %vm630_vm1, %v1340_v32  ;;  %1250 = vmatprep.mubr.msk.bf16.mxu1 %vm630_vm1, %v1342_v33 }
  0x4f   : > { %751 = vmatmul.mubr.bf16.gmra.mrb[16].mxu0 %v1344_v34  ;;  %815 = vmatmul.mubr.bf16.gmra.mrb[16].mxu1 %v1345_v35  ;;  %v351_v34 = vld [vmem:[#allocation2 + $0x28] sm:$0xff] }
  0x50   : > { %1243 = vmatprep.mubr.msk.bf16.mxu0 %vm630_vm1, %v1346_v36  ;;  %1251 = vmatprep.mubr.msk.bf16.mxu1 %vm630_vm1, %v1348_v37  ;;  %v367_v35 = vld [vmem:[#allocation2 + $0xa8] sm:$0xff] }
  0x57   : > { %759 = vmatmul.mubr.bf16.gmra.mrb[20].mxu0 %v1350_v38  ;;  %823 = vmatmul.mubr.bf16.gmra.mrb[20].mxu1 %v1351_v39 }
  0x58   : > { %1244 = vmatprep.mubr.msk.bf16.mxu0 %vm630_vm1, %v1352_v40  ;;  %1252 = vmatprep.mubr.msk.bf16.mxu1 %vm630_vm1, %v1354_v41 }
  0x5f   : > { %767 = vmatmul.mubr.bf16.gmra.mrb[24].mxu0 %v1356_v42  ;;  %831 = vmatmul.mubr.bf16.gmra.mrb[24].mxu1 %v1357_v43 }
  0x60   : > { %1245 = vmatprep.mubr.msk.bf16.mxu0 %vm630_vm1, %v1358_v44  ;;  %1253 = vmatprep.mubr.msk.bf16.mxu1 %vm630_vm1, %v1360_v45 }
  0x67   : > { %775 = vmatmul.mubr.bf16.gmra.mrb[28].mxu0 %v1362_v46  ;;  %839 = vmatmul.mubr.bf16.gmra.mrb[28].mxu1 %v1363_v47 }
 0x102   : > { %v720_v50 = vpop.f32.mrb[0].mxu0  ;;  %v784_v51 = vpop.f32.mrb[0].mxu1 }
 0x103   : > { %v847_v54 = vadd.f32 %v720_v50, %v346_v48  ;;  %v863_v55 = vadd.f32 %v784_v51, %v362_v49  ;;  %v722_v56 = vpop.f32.mrb[1].mxu0  ;;  %v786_v57 = vpop.f32.mrb[1].mxu1 }
 0x104   : > { %v723_v58 = vpop.f32.mrb[2].mxu0  ;;  %v787_v59 = vpop.f32.mrb[2].mxu1  ;;  %v352_v56 = vld [vmem:[#allocation2 + $0x30] sm:$0xff] }
 0x105   : > { %880 = vst.msk [vmem:[#allocation2] sm:$0xff] %vm313_vm0, %v847_v54  ;;  %896 = vst.msk [vmem:[#allocation2 + $0x80] sm:$0xff] %vm313_vm0, %v863_v55  ;;  %v848_v60 = vadd.f32 %v723_v58, %v347_v52  ;;  %v864_v61 = vadd.f32 %v787_v59, %v363_v53  ;;  %v725_v62 = vpop.f32.mrb[3].mxu0  ;;  %v789_v63 = vpop.f32.mrb[3].mxu1  ;;  %v368_v57 = vld [vmem:[#allocation2 + $0xb0] sm:$0xff] }
 0x106   : > { %v353_v62 = vld [vmem:[#allocation2 + $0x38] sm:$0xff] }
 0x107   : > { %881 = vst.msk [vmem:[#allocation2 + $0x8] sm:$0xff] %vm313_vm0, %v848_v60  ;;  %897 = vst.msk [vmem:[#allocation2 + $0x88] sm:$0xff] %vm313_vm0, %v864_v61  ;;  %v369_v63 = vld [vmem:[#allocation2 + $0xb8] sm:$0xff] }
 0x10a   : > { %v728_v3 = vpop.f32.mrb[4].mxu0  ;;  %v792_v4 = vpop.f32.mrb[4].mxu1 }
 0x10b   : > { %v849_v7 = vadd.f32 %v728_v3, %v348_v0  ;;  %v865_v8 = vadd.f32 %v792_v4, %v364_v1  ;;  %v730_v9 = vpop.f32.mrb[5].mxu0  ;;  %v794_v10 = vpop.f32.mrb[5].mxu1 }
 0x10c   : > { %v915_v11 = vld [vmem:[#allocation2] sm:$0xff]  ;;  %v731_v14 = vpop.f32.mrb[6].mxu0  ;;  %v795_v15 = vpop.f32.mrb[6].mxu1 }
 0x10d   : > { %v931_v13 = vld [vmem:[#allocation2 + $0x80] sm:$0xff]  ;;  %v954_v16 = vmul.f32 %v1581_v2, %v915_v11  ;;  %882 = vst.msk [vmem:[#allocation2 + $0x10] sm:$0xff] %vm313_vm0, %v849_v7  ;;  %898 = vst.msk [vmem:[#allocation2 + $0x90] sm:$0xff] %vm313_vm0, %v865_v8  ;;  %v850_v18 = vadd.f32 %v731_v14, %v349_v5  ;;  %v866_v19 = vadd.f32 %v795_v15, %v365_v6  ;;  %v733_v20 = vpop.f32.mrb[7].mxu0  ;;  %v797_v21 = vpop.f32.mrb[7].mxu1 }
 0x10e   : > { %v970_v17 = vmul.f32 %v1581_v2, %v931_v13  ;;  %v916_v22 = vld [vmem:[#allocation2 + $0x8] sm:$0xff] }
 0x10f   : > { %v932_v23 = vld [vmem:[#allocation2 + $0x88] sm:$0xff]  ;;  %v993_v24 = vadd.f32 %v1586_v12, %v954_v16  ;;  %v955_v26 = vmul.f32 %v1581_v2, %v916_v22  ;;  %883 = vst.msk [vmem:[#allocation2 + $0x18] sm:$0xff] %vm313_vm0, %v850_v18  ;;  %899 = vst.msk [vmem:[#allocation2 + $0x98] sm:$0xff] %vm313_vm0, %v866_v19  ;;  %v354_v22 = vld [vmem:[#allocation2 + $0x40] sm:$0xff] }
 0x110   : > { %v1009_v25 = vadd.f32 %v1586_v12, %v970_v17  ;;  %v971_v27 = vmul.f32 %v1581_v2, %v932_v23  ;;  %v370_v23 = vld [vmem:[#allocation2 + $0xc0] sm:$0xff] }
 0x111   : > { %1025 = vst.msk [vmem:[%s1597_s29] sm:$0xff] %vm313_vm0, %v993_v24  ;;  %v994_v30 = vadd.f32 %v1586_v12, %v955_v26 }
 0x112   : > { %1041 = vst.msk [vmem:[%s1597_s29 + $0x80] sm:$0xff] %vm313_vm0, %v1009_v25  ;;  %v1010_v31 = vadd.f32 %v1586_v12, %v971_v27  ;;  %v736_v32 = vpop.f32.mrb[8].mxu0  ;;  %v800_v33 = vpop.f32.mrb[8].mxu1 }
 0x113   : > { %1026 = vst.msk [vmem:[%s1597_s29 + $0x8] sm:$0xff] %vm313_vm0, %v994_v30  ;;  %v851_v36 = vadd.f32 %v736_v32, %v350_v28  ;;  %v867_v37 = vadd.f32 %v800_v33, %v366_v29  ;;  %v738_v38 = vpop.f32.mrb[9].mxu0  ;;  %v802_v39 = vpop.f32.mrb[9].mxu1  ;;  %v355_v28 = vld [vmem:[#allocation2 + $0x48] sm:$0xff] }
 0x114   : > { %1042 = vst.msk [vmem:[%s1597_s29 + $0x88] sm:$0xff] %vm313_vm0, %v1010_v31  ;;  %v917_v40 = vld [vmem:[#allocation2 + $0x10] sm:$0xff]  ;;  %v739_v42 = vpop.f32.mrb[10].mxu0  ;;  %v803_v43 = vpop.f32.mrb[10].mxu1  ;;  %v371_v29 = vld [vmem:[#allocation2 + $0xc8] sm:$0xff] }
 0x115   : > { %v933_v41 = vld [vmem:[#allocation2 + $0x90] sm:$0xff]  ;;  %v956_v44 = vmul.f32 %v1581_v2, %v917_v40  ;;  %884 = vst.msk [vmem:[#allocation2 + $0x20] sm:$0xff] %vm313_vm0, %v851_v36  ;;  %900 = vst.msk [vmem:[#allocation2 + $0xa0] sm:$0xff] %vm313_vm0, %v867_v37  ;;  %v852_v46 = vadd.f32 %v739_v42, %v351_v34  ;;  %v868_v47 = vadd.f32 %v803_v43, %v367_v35  ;;  %v741_v48 = vpop.f32.mrb[11].mxu0  ;;  %v805_v49 = vpop.f32.mrb[11].mxu1 }
 0x116   : > { %v972_v45 = vmul.f32 %v1581_v2, %v933_v41  ;;  %v918_v50 = vld [vmem:[#allocation2 + $0x18] sm:$0xff] }
 0x117   : > { %v934_v51 = vld [vmem:[#allocation2 + $0x98] sm:$0xff]  ;;  %v995_v52 = vadd.f32 %v1586_v12, %v956_v44  ;;  %v957_v54 = vmul.f32 %v1581_v2, %v918_v50  ;;  %885 = vst.msk [vmem:[#allocation2 + $0x28] sm:$0xff] %vm313_vm0, %v852_v46  ;;  %901 = vst.msk [vmem:[#allocation2 + $0xa8] sm:$0xff] %vm313_vm0, %v868_v47  ;;  %v356_v50 = vld [vmem:[#allocation2 + $0x50] sm:$0xff] }
 0x118   : > { %v1011_v53 = vadd.f32 %v1586_v12, %v972_v45  ;;  %v973_v55 = vmul.f32 %v1581_v2, %v934_v51  ;;  %v372_v51 = vld [vmem:[#allocation2 + $0xd0] sm:$0xff] }
 0x119   : > { %1027 = vst.msk [vmem:[%s1597_s29 + $0x10] sm:$0xff] %vm313_vm0, %v995_v52  ;;  %v996_v58 = vadd.f32 %v1586_v12, %v957_v54 }
 0x11a   : > { %1043 = vst.msk [vmem:[%s1597_s29 + $0x90] sm:$0xff] %vm313_vm0, %v1011_v53  ;;  %v1012_v59 = vadd.f32 %v1586_v12, %v973_v55  ;;  %v744_v60 = vpop.f32.mrb[12].mxu0  ;;  %v808_v61 = vpop.f32.mrb[12].mxu1 }
 0x11b   : > { %1028 = vst.msk [vmem:[%s1597_s29 + $0x18] sm:$0xff] %vm313_vm0, %v996_v58  ;;  %v853_v0 = vadd.f32 %v744_v60, %v352_v56  ;;  %v869_v1 = vadd.f32 %v808_v61, %v368_v57  ;;  %v746_v3 = vpop.f32.mrb[13].mxu0  ;;  %v810_v4 = vpop.f32.mrb[13].mxu1  ;;  %v357_v56 = vld [vmem:[#allocation2 + $0x58] sm:$0xff] }
 0x11c   : > { %1044 = vst.msk [vmem:[%s1597_s29 + $0x98] sm:$0xff] %vm313_vm0, %v1012_v59  ;;  %v919_v5 = vld [vmem:[#allocation2 + $0x20] sm:$0xff]  ;;  %v747_v7 = vpop.f32.mrb[14].mxu0  ;;  %v811_v8 = vpop.f32.mrb[14].mxu1  ;;  %v373_v57 = vld [vmem:[#allocation2 + $0xd8] sm:$0xff] }
 0x11d   : > { %v935_v6 = vld [vmem:[#allocation2 + $0xa0] sm:$0xff]  ;;  %v958_v9 = vmul.f32 %v1581_v2, %v919_v5  ;;  %886 = vst.msk [vmem:[#allocation2 + $0x30] sm:$0xff] %vm313_vm0, %v853_v0  ;;  %902 = vst.msk [vmem:[#allocation2 + $0xb0] sm:$0xff] %vm313_vm0, %v869_v1  ;;  %v854_v11 = vadd.f32 %v747_v7, %v353_v62  ;;  %v870_v13 = vadd.f32 %v811_v8, %v369_v63  ;;  %v749_v14 = vpop.f32.mrb[15].mxu0  ;;  %v813_v15 = vpop.f32.mrb[15].mxu1 }
 0x11e   : > { %v974_v10 = vmul.f32 %v1581_v2, %v935_v6  ;;  %v920_v16 = vld [vmem:[#allocation2 + $0x28] sm:$0xff] }
 0x11f   : > { %v936_v17 = vld [vmem:[#allocation2 + $0xa8] sm:$0xff]  ;;  %v997_v18 = vadd.f32 %v1586_v12, %v958_v9  ;;  %v959_v20 = vmul.f32 %v1581_v2, %v920_v16  ;;  %887 = vst.msk [vmem:[#allocation2 + $0x38] sm:$0xff] %vm313_vm0, %v854_v11  ;;  %903 = vst.msk [vmem:[#allocation2 + $0xb8] sm:$0xff] %vm313_vm0, %v870_v13  ;;  %v358_v16 = vld [vmem:[#allocation2 + $0x60] sm:$0xff] }
 0x120   : > { %v1013_v19 = vadd.f32 %v1586_v12, %v974_v10  ;;  %v975_v21 = vmul.f32 %v1581_v2, %v936_v17  ;;  %v374_v17 = vld [vmem:[#allocation2 + $0xe0] sm:$0xff] }
 0x121   : > { %1029 = vst.msk [vmem:[%s1597_s29 + $0x20] sm:$0xff] %vm313_vm0, %v997_v18  ;;  %v998_v24 = vadd.f32 %v1586_v12, %v959_v20 }
 0x122   : > { %1045 = vst.msk [vmem:[%s1597_s29 + $0xa0] sm:$0xff] %vm313_vm0, %v1013_v19  ;;  %v1014_v25 = vadd.f32 %v1586_v12, %v975_v21  ;;  %v752_v26 = vpop.f32.mrb[16].mxu0  ;;  %v816_v27 = vpop.f32.mrb[16].mxu1 }
 0x123   : > { %1030 = vst.msk [vmem:[%s1597_s29 + $0x28] sm:$0xff] %vm313_vm0, %v998_v24  ;;  %v855_v30 = vadd.f32 %v752_v26, %v354_v22  ;;  %v871_v31 = vadd.f32 %v816_v27, %v370_v23  ;;  %v754_v32 = vpop.f32.mrb[17].mxu0  ;;  %v818_v33 = vpop.f32.mrb[17].mxu1  ;;  %v359_v22 = vld [vmem:[#allocation2 + $0x68] sm:$0xff] }
 0x124   : > { %1046 = vst.msk [vmem:[%s1597_s29 + $0xa8] sm:$0xff] %vm313_vm0, %v1014_v25  ;;  %v921_v34 = vld [vmem:[#allocation2 + $0x30] sm:$0xff]  ;;  %v755_v36 = vpop.f32.mrb[18].mxu0  ;;  %v819_v37 = vpop.f32.mrb[18].mxu1  ;;  %v375_v23 = vld [vmem:[#allocation2 + $0xe8] sm:$0xff] }
 0x125   : > { %v937_v35 = vld [vmem:[#allocation2 + $0xb0] sm:$0xff]  ;;  %v960_v38 = vmul.f32 %v1581_v2, %v921_v34  ;;  %888 = vst.msk [vmem:[#allocation2 + $0x40] sm:$0xff] %vm313_vm0, %v855_v30  ;;  %904 = vst.msk [vmem:[#allocation2 + $0xc0] sm:$0xff] %vm313_vm0, %v871_v31  ;;  %v856_v40 = vadd.f32 %v755_v36, %v355_v28  ;;  %v872_v41 = vadd.f32 %v819_v37, %v371_v29  ;;  %v757_v42 = vpop.f32.mrb[19].mxu0  ;;  %v821_v43 = vpop.f32.mrb[19].mxu1 }
 0x126   : > { %v976_v39 = vmul.f32 %v1581_v2, %v937_v35  ;;  %v922_v44 = vld [vmem:[#allocation2 + $0x38] sm:$0xff] }
 0x127   : > { %v938_v45 = vld [vmem:[#allocation2 + $0xb8] sm:$0xff]  ;;  %v999_v46 = vadd.f32 %v1586_v12, %v960_v38  ;;  %v961_v48 = vmul.f32 %v1581_v2, %v922_v44  ;;  %889 = vst.msk [vmem:[#allocation2 + $0x48] sm:$0xff] %vm313_vm0, %v856_v40  ;;  %905 = vst.msk [vmem:[#allocation2 + $0xc8] sm:$0xff] %vm313_vm0, %v872_v41  ;;  %v360_v44 = vld [vmem:[#allocation2 + $0x70] sm:$0xff] }
 0x128   : > { %v1015_v47 = vadd.f32 %v1586_v12, %v976_v39  ;;  %v977_v49 = vmul.f32 %v1581_v2, %v938_v45  ;;  %v376_v45 = vld [vmem:[#allocation2 + $0xf0] sm:$0xff] }
 0x129   : > { %1031 = vst.msk [vmem:[%s1597_s29 + $0x30] sm:$0xff] %vm313_vm0, %v999_v46  ;;  %v1000_v52 = vadd.f32 %v1586_v12, %v961_v48 }
 0x12a   : > { %1047 = vst.msk [vmem:[%s1597_s29 + $0xb0] sm:$0xff] %vm313_vm0, %v1015_v47  ;;  %v1016_v53 = vadd.f32 %v1586_v12, %v977_v49  ;;  %v760_v54 = vpop.f32.mrb[20].mxu0  ;;  %v824_v55 = vpop.f32.mrb[20].mxu1 }
 0x12b   : > { %1032 = vst.msk [vmem:[%s1597_s29 + $0x38] sm:$0xff] %vm313_vm0, %v1000_v52  ;;  %v857_v58 = vadd.f32 %v760_v54, %v356_v50  ;;  %v873_v59 = vadd.f32 %v824_v55, %v372_v51  ;;  %v762_v60 = vpop.f32.mrb[21].mxu0  ;;  %v826_v61 = vpop.f32.mrb[21].mxu1  ;;  %v361_v50 = vld [vmem:[#allocation2 + $0x78] sm:$0xff] }
 0x12c   : > { %1048 = vst.msk [vmem:[%s1597_s29 + $0xb8] sm:$0xff] %vm313_vm0, %v1016_v53  ;;  %v923_v62 = vld [vmem:[#allocation2 + $0x40] sm:$0xff]  ;;  %v763_v0 = vpop.f32.mrb[22].mxu0  ;;  %v827_v1 = vpop.f32.mrb[22].mxu1  ;;  %v377_v51 = vld [vmem:[#allocation2 + $0xf8] sm:$0xff] }
 0x12d   : > { %v939_v63 = vld [vmem:[#allocation2 + $0xc0] sm:$0xff]  ;;  %v962_v3 = vmul.f32 %v1581_v2, %v923_v62  ;;  %890 = vst.msk [vmem:[#allocation2 + $0x50] sm:$0xff] %vm313_vm0, %v857_v58  ;;  %906 = vst.msk [vmem:[#allocation2 + $0xd0] sm:$0xff] %vm313_vm0, %v873_v59  ;;  %v858_v5 = vadd.f32 %v763_v0, %v357_v56  ;;  %v874_v6 = vadd.f32 %v827_v1, %v373_v57  ;;  %v765_v7 = vpop.f32.mrb[23].mxu0  ;;  %v829_v8 = vpop.f32.mrb[23].mxu1 }
 0x12e   : > { %v978_v4 = vmul.f32 %v1581_v2, %v939_v63  ;;  %v924_v9 = vld [vmem:[#allocation2 + $0x48] sm:$0xff] }
 0x12f   : > { %v940_v10 = vld [vmem:[#allocation2 + $0xc8] sm:$0xff]  ;;  %v1001_v11 = vadd.f32 %v1586_v12, %v962_v3  ;;  %v963_v14 = vmul.f32 %v1581_v2, %v924_v9  ;;  %891 = vst.msk [vmem:[#allocation2 + $0x58] sm:$0xff] %vm313_vm0, %v858_v5  ;;  %907 = vst.msk [vmem:[#allocation2 + $0xd8] sm:$0xff] %vm313_vm0, %v874_v6 }
 0x130   : > { %v1017_v13 = vadd.f32 %v1586_v12, %v978_v4  ;;  %v979_v15 = vmul.f32 %v1581_v2, %v940_v10 }
 0x131   : > { %1033 = vst.msk [vmem:[%s1597_s29 + $0x40] sm:$0xff] %vm313_vm0, %v1001_v11  ;;  %v1002_v18 = vadd.f32 %v1586_v12, %v963_v14 }
 0x132   : > { %1049 = vst.msk [vmem:[%s1597_s29 + $0xc0] sm:$0xff] %vm313_vm0, %v1017_v13  ;;  %v1018_v19 = vadd.f32 %v1586_v12, %v979_v15  ;;  %v768_v20 = vpop.f32.mrb[24].mxu0  ;;  %v832_v21 = vpop.f32.mrb[24].mxu1 }
 0x133   : > { %1034 = vst.msk [vmem:[%s1597_s29 + $0x48] sm:$0xff] %vm313_vm0, %v1002_v18  ;;  %v859_v24 = vadd.f32 %v768_v20, %v358_v16  ;;  %v875_v25 = vadd.f32 %v832_v21, %v374_v17  ;;  %v770_v26 = vpop.f32.mrb[25].mxu0  ;;  %v834_v27 = vpop.f32.mrb[25].mxu1 }
 0x134   : > { %1050 = vst.msk [vmem:[%s1597_s29 + $0xc8] sm:$0xff] %vm313_vm0, %v1018_v19  ;;  %v925_v28 = vld [vmem:[#allocation2 + $0x50] sm:$0xff]  ;;  %v771_v30 = vpop.f32.mrb[26].mxu0  ;;  %v835_v31 = vpop.f32.mrb[26].mxu1 }
 0x135   : > { %v941_v29 = vld [vmem:[#allocation2 + $0xd0] sm:$0xff]  ;;  %v964_v32 = vmul.f32 %v1581_v2, %v925_v28  ;;  %892 = vst.msk [vmem:[#allocation2 + $0x60] sm:$0xff] %vm313_vm0, %v859_v24  ;;  %908 = vst.msk [vmem:[#allocation2 + $0xe0] sm:$0xff] %vm313_vm0, %v875_v25  ;;  %v860_v34 = vadd.f32 %v771_v30, %v359_v22  ;;  %v876_v35 = vadd.f32 %v835_v31, %v375_v23  ;;  %v773_v36 = vpop.f32.mrb[27].mxu0  ;;  %v837_v37 = vpop.f32.mrb[27].mxu1 }
 0x136   : > { %v980_v33 = vmul.f32 %v1581_v2, %v941_v29  ;;  %v926_v38 = vld [vmem:[#allocation2 + $0x58] sm:$0xff] }
 0x137   : > { %v942_v39 = vld [vmem:[#allocation2 + $0xd8] sm:$0xff]  ;;  %v1003_v40 = vadd.f32 %v1586_v12, %v964_v32  ;;  %v965_v42 = vmul.f32 %v1581_v2, %v926_v38  ;;  %893 = vst.msk [vmem:[#allocation2 + $0x68] sm:$0xff] %vm313_vm0, %v860_v34  ;;  %909 = vst.msk [vmem:[#allocation2 + $0xe8] sm:$0xff] %vm313_vm0, %v876_v35 }
 0x138   : > { %v1019_v41 = vadd.f32 %v1586_v12, %v980_v33  ;;  %v981_v43 = vmul.f32 %v1581_v2, %v942_v39 }
 0x139   : > { %1035 = vst.msk [vmem:[%s1597_s29 + $0x50] sm:$0xff] %vm313_vm0, %v1003_v40  ;;  %v1004_v46 = vadd.f32 %v1586_v12, %v965_v42 }
 0x13a   : > { %1051 = vst.msk [vmem:[%s1597_s29 + $0xd0] sm:$0xff] %vm313_vm0, %v1019_v41  ;;  %v1020_v47 = vadd.f32 %v1586_v12, %v981_v43  ;;  %v776_v48 = vpop.f32.mrb[28].mxu0  ;;  %v840_v49 = vpop.f32.mrb[28].mxu1 }
 0x13b   : > { %1036 = vst.msk [vmem:[%s1597_s29 + $0x58] sm:$0xff] %vm313_vm0, %v1004_v46  ;;  %v861_v52 = vadd.f32 %v776_v48, %v360_v44  ;;  %v877_v53 = vadd.f32 %v840_v49, %v376_v45  ;;  %v778_v54 = vpop.f32.mrb[29].mxu0  ;;  %v842_v55 = vpop.f32.mrb[29].mxu1 }
 0x13c   : > { %1052 = vst.msk [vmem:[%s1597_s29 + $0xd8] sm:$0xff] %vm313_vm0, %v1020_v47  ;;  %v927_v56 = vld [vmem:[#allocation2 + $0x60] sm:$0xff]  ;;  %v779_v58 = vpop.f32.mrb[30].mxu0  ;;  %v843_v59 = vpop.f32.mrb[30].mxu1 }
 0x13d   : > { %v943_v57 = vld [vmem:[#allocation2 + $0xe0] sm:$0xff]  ;;  %v966_v60 = vmul.f32 %v1581_v2, %v927_v56  ;;  %894 = vst.msk [vmem:[#allocation2 + $0x70] sm:$0xff] %vm313_vm0, %v861_v52  ;;  %910 = vst.msk [vmem:[#allocation2 + $0xf0] sm:$0xff] %vm313_vm0, %v877_v53  ;;  %v862_v62 = vadd.f32 %v779_v58, %v361_v50  ;;  %v878_v63 = vadd.f32 %v843_v59, %v377_v51  ;;  %v781_v0 = vpop.f32.mrb[31].mxu0  ;;  %v845_v1 = vpop.f32.mrb[31].mxu1 }
 0x13e   : > { %v982_v61 = vmul.f32 %v1581_v2, %v943_v57  ;;  %v928_v3 = vld [vmem:[#allocation2 + $0x68] sm:$0xff] }
 0x13f   : > { %v944_v4 = vld [vmem:[#allocation2 + $0xe8] sm:$0xff]  ;;  %v1005_v5 = vadd.f32 %v1586_v12, %v966_v60  ;;  %v967_v7 = vmul.f32 %v1581_v2, %v928_v3  ;;  %895 = vst.msk [vmem:[#allocation2 + $0x78] sm:$0xff] %vm313_vm0, %v862_v62  ;;  %911 = vst.msk [vmem:[#allocation2 + $0xf8] sm:$0xff] %vm313_vm0, %v878_v63 }
 0x140   : > { %v1021_v6 = vadd.f32 %v1586_v12, %v982_v61  ;;  %v983_v8 = vmul.f32 %v1581_v2, %v944_v4 }
 0x141   : > { %1037 = vst.msk [vmem:[%s1597_s29 + $0x60] sm:$0xff] %vm313_vm0, %v1005_v5  ;;  %v1006_v9 = vadd.f32 %v1586_v12, %v967_v7 }
 0x142   : > { %1053 = vst.msk [vmem:[%s1597_s29 + $0xe0] sm:$0xff] %vm313_vm0, %v1021_v6  ;;  %v1022_v10 = vadd.f32 %v1586_v12, %v983_v8 }
 0x143   : > { %1038 = vst.msk [vmem:[%s1597_s29 + $0x68] sm:$0xff] %vm313_vm0, %v1006_v9 }
 0x144   : > { %1054 = vst.msk [vmem:[%s1597_s29 + $0xe8] sm:$0xff] %vm313_vm0, %v1022_v10  ;;  %v929_v11 = vld [vmem:[#allocation2 + $0x70] sm:$0xff] }
 0x145   : > { %v945_v13 = vld [vmem:[#allocation2 + $0xf0] sm:$0xff]  ;;  %v968_v14 = vmul.f32 %v1581_v2, %v929_v11 }
 0x146   : > { %v984_v15 = vmul.f32 %v1581_v2, %v945_v13  ;;  %v930_v16 = vld [vmem:[#allocation2 + $0x78] sm:$0xff] }
 0x147   : > { %v946_v17 = vld [vmem:[#allocation2 + $0xf8] sm:$0xff]  ;;  %v1007_v18 = vadd.f32 %v1586_v12, %v968_v14  ;;  %v969_v20 = vmul.f32 %v1581_v2, %v930_v16 }
 0x148   : > { %v1023_v19 = vadd.f32 %v1586_v12, %v984_v15  ;;  %v985_v21 = vmul.f32 %v1581_v2, %v946_v17 }
 0x149   : > { %1039 = vst.msk [vmem:[%s1597_s29 + $0x70] sm:$0xff] %vm313_vm0, %v1007_v18  ;;  %v1008_v22 = vadd.f32 %v1586_v12, %v969_v20 }
 0x14a   : > { %1055 = vst.msk [vmem:[%s1597_s29 + $0xf0] sm:$0xff] %vm313_vm0, %v1023_v19  ;;  %v1024_v23 = vadd.f32 %v1586_v12, %v985_v21 }
 0x14b   : > { %1040 = vst.msk [vmem:[%s1597_s29 + $0x78] sm:$0xff] %vm313_vm0, %v1008_v22 }
 0x14c   : > { %1056 = vst.msk [vmem:[%s1597_s29 + $0xf8] sm:$0xff] %vm313_vm0, %v1024_v23 }
 0x14d PF: > { %s14_s17 = sadd.s32 1, %s1386_s17   ;;  %s1765_s15 = smov %s1382_s16 }
 0x14e   : > { %p11_p5 = scmp.ge.s32.totalorder %s14_s17, 4   ;;  %s1766_s16 = smov %s1768_s18 }
 0x150   :  { %13 = sbr.rel (!%p11_p5) target bundleno = 2 (0x2), region = 83 }

</bundles_post_ra>
